<compile_context>
chip_gen: v6e
topology: v6e:2x2x1
jax: 0.10.0
libtpu: 0.0.40
codegen_flags: <defaults>
</compile_context>

<pallas_src>
import math

import jax
import jax.numpy as jnp
from jax.experimental import pallas as pl
from jax.experimental.pallas import tpu as pltpu


def embedding_kernel(x_ref, w_ref, b_ref, invf_ref, phase_ref, t_ref, o_ref):
    # x_ref: (tm, Din), w_ref: (Din, tn), b_ref/invf_ref/phase_ref: (1, tn),
    # t_ref: (tm, 1), o_ref: (tm, tn)

    # Linear layer on the MXU (f32 accumulate).
    y = jnp.dot(x_ref[...], w_ref[...], preferred_element_type=jnp.float32)
    y = y + b_ref[...]

    # Sinusoidal time encoding: single sin per element, frequencies/phases are
    # precomputed (1, tn) rows broadcast against the (tm, 1) times column.
    t = t_ref[...]                                        # (tm, 1), loaded once
    pe = jnp.sin(t * invf_ref[...] + phase_ref[...])      # (tm, tn)

    # dropout(p=0) is the identity.
    o_ref[...] = (y + pe).astype(o_ref.dtype)


def _round_up(n, m):
    return ((n + m - 1) // m) * m


def _time_encoding_tables(H, Hp):
    """inv_freq and phase rows of padded width Hp (real width H)."""
    col = jnp.arange(Hp)
    even_col = (col // 2) * 2
    inv_freq = jnp.exp(even_col.astype(jnp.float32) * (-math.log(10000.0) / H))
    phase = jnp.where((col % 2) == 0, 0.0, math.pi / 2.0).astype(jnp.float32)
    return inv_freq.reshape(1, Hp), phase.reshape(1, Hp)


def embedding_forward(x, times, w, b, *, tm=512, tn=512):
    """x: [B, T, Din] f32, times: [B, T] f32, w: [Din, H], b: [H] -> [B, T, H]."""
    B, T, Din = x.shape
    H = w.shape[1]
    M = B * T

    # --- padding for lane-dense stores and a ragged-free grid -----------------
    Hp = _round_up(H, 128)                 # lane-dense output width
    tn = min(tn, Hp)
    tm = min(tm, _round_up(M, 8))          # don't over-tile tiny problems
    Mp = _round_up(M, tm)

    x2 = x.reshape(M, Din)
    t2 = times.reshape(M, 1)
    if Mp != M:
        x2 = jnp.pad(x2, ((0, Mp - M), (0, 0)))
        t2 = jnp.pad(t2, ((0, Mp - M), (0, 0)))
    w2 = jnp.pad(w, ((0, 0), (0, Hp - H))) if Hp != H else w
    b2 = jnp.pad(b, (0, Hp - H)).reshape(1, Hp) if Hp != H else b.reshape(1, Hp)

    inv_freq, phase = _time_encoding_tables(H, Hp)

    grid = (Mp // tm, Hp // tn)

    # VMEM budget hint: double-buffered tiles of every operand (f32).
    tile_bytes = 2 * 4 * (tm * Din + tm + tm * tn + Din * tn + 3 * tn)
    vmem_limit = min(max(2 * tile_bytes, 32 * 1024 * 1024), 64 * 1024 * 1024)

    cost = pl.CostEstimate(
        flops=2 * M * Din * H,
        transcendentals=M * H,
        bytes_accessed=4 * (M * Din + Din * H + H + M + M * H),
    )

    out = pl.pallas_call(
        embedding_kernel,
        out_shape=jax.ShapeDtypeStruct((Mp, Hp), x.dtype),
        grid_spec=pltpu.PrefetchScalarGridSpec(
            num_scalar_prefetch=0,
            grid=grid,
            in_specs=[
                pl.BlockSpec((tm, Din), lambda i, j: (i, 0)),   # x row tile
                pl.BlockSpec((Din, tn), lambda i, j: (0, j)),   # weight col tile
                pl.BlockSpec((1, tn), lambda i, j: (0, j)),     # bias
                pl.BlockSpec((1, tn), lambda i, j: (0, j)),     # inv_freq
                pl.BlockSpec((1, tn), lambda i, j: (0, j)),     # phase
                pl.BlockSpec((tm, 1), lambda i, j: (i, 0)),     # times column
            ],
            out_specs=pl.BlockSpec((tm, tn), lambda i, j: (i, j)),
        ),
        compiler_params=pltpu.CompilerParams(
            dimension_semantics=("parallel", "parallel"),
            vmem_limit_bytes=vmem_limit,
        ),
        cost_estimate=cost,
    )(x2, w2, b2, inv_freq, phase, t2)

    return out[:M, :H].reshape(B, T, H)


def _reference(x, times, w, b):
    """Pure-JAX reference for correctness checking."""
    y = jnp.einsum("btd,dh->bth", x, w) + b
    H = w.shape[1]
    col = jnp.arange(H)
    even_col = (col // 2) * 2
    inv_freq = jnp.exp(even_col.astype(jnp.float32) * (-math.log(10000.0) / H))
    arg = times[..., None] * inv_freq
    pe = jnp.where((col % 2) == 0, jnp.sin(arg), jnp.cos(arg))
    return y + pe


if __name__ == "__main__":
    B, T, INPUT_DIM, HIDDEN_DIM = 2, 8, 32, 32

    key = jax.random.PRNGKey(0)
    kx, kt, kw, kb = jax.random.split(key, 4)

    x = jax.random.normal(kx, (B, T, INPUT_DIM), dtype=jnp.float32)
    times = jax.random.uniform(kt, (B, T), dtype=jnp.float32)

    # Deterministic nn.Linear-style init: U(-1/sqrt(fan_in), 1/sqrt(fan_in)).
    bound = 1.0 / math.sqrt(INPUT_DIM)
    w = jax.random.uniform(kw, (INPUT_DIM, HIDDEN_DIM), dtype=jnp.float32,
                           minval=-bound, maxval=bound)
    b = jax.random.uniform(kb, (HIDDEN_DIM,), dtype=jnp.float32,
                           minval=-bound, maxval=bound)

    out = embedding_forward(x, times, w, b)
    out = jax.block_until_ready(out)

    ref = _reference(x, times, w, b)
    assert out.shape == (B, T, HIDDEN_DIM)
    assert jnp.allclose(out, ref, atol=1e-5, rtol=1e-5)

    print("KERNEL_OK")
</pallas_src>

<mosaic_0001>
module attributes {stable_mosaic.version = 11 : i64} {
  func.func @embedding_kernel(%arg0: i32, %arg1: i32, %arg2: memref<16x32xf32, #tpu.memory_space<vmem>>, %arg3: memref<32x128xf32, #tpu.memory_space<vmem>>, %arg4: memref<1x128xf32, #tpu.memory_space<vmem>>, %arg5: memref<1x128xf32, #tpu.memory_space<vmem>>, %arg6: memref<1x128xf32, #tpu.memory_space<vmem>>, %arg7: memref<16x1xf32, #tpu.memory_space<vmem>>, %arg8: memref<16x128xf32, #tpu.memory_space<vmem>>) attributes {dimension_semantics = [#tpu.dimension_semantics<parallel>, #tpu.dimension_semantics<parallel>], iteration_bounds = array<i64: 1, 1>, scalar_prefetch = 0 : i64, scratch_operands = 0 : i64, tpu.core_type = #tpu.core_type<tc>, window_params = [{transform_indices = @transform_0, window_bounds = array<i64: 16, 32>}, {transform_indices = @transform_1, window_bounds = array<i64: 32, 128>}, {transform_indices = @transform_2, window_bounds = array<i64: 1, 128>}, {transform_indices = @transform_3, window_bounds = array<i64: 1, 128>}, {transform_indices = @transform_4, window_bounds = array<i64: 1, 128>}, {transform_indices = @transform_5, window_bounds = array<i64: 16, 1>}, {transform_indices = @transform_6, window_bounds = array<i64: 16, 128>}]} {
    %c0 = arith.constant 0 : index
    %c0_0 = arith.constant 0 : index
    %0 = vector.load %arg2[%c0, %c0_0] : memref<16x32xf32, #tpu.memory_space<vmem>>, vector<16x32xf32>
    %c0_1 = arith.constant 0 : index
    %c0_2 = arith.constant 0 : index
    %1 = vector.load %arg3[%c0_1, %c0_2] : memref<32x128xf32, #tpu.memory_space<vmem>>, vector<32x128xf32>
    %cst = arith.constant dense<0.000000e+00> : vector<16x128xf32>
    %2 = tpu.matmul %0, %1, %cst {dimension_numbers = #tpu.dot_dimension_numbers<[1], [0], [0], [1], [0, 0, 1, 1], [], []>} : vector<16x32xf32>, vector<32x128xf32>, vector<16x128xf32> -> vector<16x128xf32>
    %c0_3 = arith.constant 0 : index
    %c0_4 = arith.constant 0 : index
    %3 = vector.load %arg4[%c0_3, %c0_4] : memref<1x128xf32, #tpu.memory_space<vmem>>, vector<1x128xf32>
    %4 = vector.broadcast %3 : vector<1x128xf32> to vector<16x128xf32>
    %5 = arith.addf %2, %4 : vector<16x128xf32>
    %c0_5 = arith.constant 0 : index
    %c0_6 = arith.constant 0 : index
    %6 = vector.load %arg7[%c0_5, %c0_6] : memref<16x1xf32, #tpu.memory_space<vmem>>, vector<16x1xf32>
    %c0_7 = arith.constant 0 : index
    %c0_8 = arith.constant 0 : index
    %7 = vector.load %arg5[%c0_7, %c0_8] : memref<1x128xf32, #tpu.memory_space<vmem>>, vector<1x128xf32>
    %8 = vector.broadcast %6 : vector<16x1xf32> to vector<16x128xf32>
    %9 = vector.broadcast %7 : vector<1x128xf32> to vector<16x128xf32>
    %10 = arith.mulf %8, %9 : vector<16x128xf32>
    %c0_9 = arith.constant 0 : index
    %c0_10 = arith.constant 0 : index
    %11 = vector.load %arg6[%c0_9, %c0_10] : memref<1x128xf32, #tpu.memory_space<vmem>>, vector<1x128xf32>
    %12 = vector.broadcast %11 : vector<1x128xf32> to vector<16x128xf32>
    %13 = arith.addf %10, %12 : vector<16x128xf32>
    %14 = math.sin %13 : vector<16x128xf32>
    %15 = arith.addf %5, %14 : vector<16x128xf32>
    %c0_11 = arith.constant 0 : index
    %c0_12 = arith.constant 0 : index
    %16 = vector.load %arg8[%c0_11, %c0_12] : memref<16x128xf32, #tpu.memory_space<vmem>>, vector<16x128xf32>
    tpu.vector_store %arg8[%c0_11, %c0_12], %15 {strides = array<i32>} : memref<16x128xf32, #tpu.memory_space<vmem>>, vector<16x128xf32>,
    return
  }
  func.func @transform_0(%arg0: i32, %arg1: i32) -> (i32, i32) {
    %c0_i32 = arith.constant 0 : i32
    %c0_i32_0 = arith.constant 0 : i32
    return %arg0, %c0_i32 : i32, i32
  }
  func.func @transform_1(%arg0: i32, %arg1: i32) -> (i32, i32) {
    %c0_i32 = arith.constant 0 : i32
    %c0_i32_0 = arith.constant 0 : i32
    return %c0_i32, %arg1 : i32, i32
  }
  func.func @transform_2(%arg0: i32, %arg1: i32) -> (i32, i32) {
    %c0_i32 = arith.constant 0 : i32
    %c0_i32_0 = arith.constant 0 : i32
    return %c0_i32, %arg1 : i32, i32
  }
  func.func @transform_3(%arg0: i32, %arg1: i32) -> (i32, i32) {
    %c0_i32 = arith.constant 0 : i32
    %c0_i32_0 = arith.constant 0 : i32
    return %c0_i32, %arg1 : i32, i32
  }
  func.func @transform_4(%arg0: i32, %arg1: i32) -> (i32, i32) {
    %c0_i32 = arith.constant 0 : i32
    %c0_i32_0 = arith.constant 0 : i32
    return %c0_i32, %arg1 : i32, i32
  }
  func.func @transform_5(%arg0: i32, %arg1: i32) -> (i32, i32) {
    %c0_i32 = arith.constant 0 : i32
    %c0_i32_0 = arith.constant 0 : i32
    return %arg0, %c0_i32 : i32, i32
  }
  func.func @transform_6(%arg0: i32, %arg1: i32) -> (i32, i32) {
    %c0_i32 = arith.constant 0 : i32
    return %arg0, %arg1 : i32, i32
  }
}

</mosaic_0001>

<bundles_post_ra>
// kernel: tpu_custom_call.1
= control target key start
LH: loop header
LB: loop body
LE: loop exit
PB: predicated region body
PF: predicated region fallthrough
CT: control target
= control target key end

     0   :  { %11 = vsyncpa [#allocation3], 0  ;;  %s664_s0 = inlined_call_operand.vmem [shape: f32[16,32], index: 0, kind: input, shape index: {}]   ;;  %s665_s1 = inlined_call_operand.hbm [shape: f32[32,128], index: 1, kind: input, shape index: {}]   ;;  %s666_s2 = inlined_call_operand.vmem [shape: f32[1,128], index: 2, kind: input, shape index: {}]   ;;  %s667_s3 = inlined_call_operand.vmem [shape: f32[1,128], index: 3, kind: input, shape index: {}]   ;;  %s668_s4 = inlined_call_operand.vmem [shape: f32[1,128], index: 4, kind: input, shape index: {}]   ;;  %s669_s5 = inlined_call_operand.vmem [shape: f32[16,1], index: 5, kind: input, shape index: {}]   ;;  %s670_s6 = inlined_call_operand.hbm [shape: f32[16,128], index: 6, kind: output, shape index: {}]  }
   0x1   :  { %12 = vsyncpa [#allocation4], 0  ;;  %s494_s21 = smov [#allocation2]  }
   0x2   :  { %s20_s22 = sshll.u32 %s494_s21, 4  ;;  %s21_s22 = int_to_ptr.vmem [resolvable:$true] %s20_s22 }
   0x3   :  { %s458_s23 = scalar_lea.vmem %s21_s22, 512  ;;  %p463_p1 = scmp.lt.s32.totalorder %s21_s22, %s21_s22 }
   0x4   :  { %p459_p0 = scmp.ne.s32.totalorder %s21_s22, %s458_s23  ;;  %p464_p2 = scmp.lt.s32.totalorder %s458_s23, %s458_s23 }
   0x6   :  { %p465_p3 = por %p464_p2, %p463_p1 }
   0x8   :  { %p466_p4 = pnand %p465_p3, %p459_p0 }
   0xa   :  { %469 = shalt.err (!%p466_p4)
}
   0xb   :  { %s495_s24 = smov 128   ;;  %s496_s25 = smov 8  }
   0xc   :  { %26 = dma.hbm_to_vmem [thread:$0]  %s665_s1, 512, %s21_s22, [#allocation3], %s495_s24, %s495_s24, %s496_s25  }
   0xd   :  { %490 = dma.done.wait [#allocation3], 512  }
   0xe   :  { %491 = vsyncadd [#allocation3], 4294966784  ;;  %v497_v0 = vmov 0   ;;  %v133_v1 = vld [vmem:[%s669_s5] sm:$0xff]  ;;  %v43_v2 = vld [vmem:[#allocation2 + $0x18] sm:$0xff]  ;;  %vm51_vm0 = vcmask 261120  }
   0xf   :  { %441 = vset.pattern.permute.xlu0 %v497_v0  ;;  %411 = vmatprep.subr.mxu0 %v43_v2  ;;  %v42_v3 = vld [vmem:[#allocation2 + $0x10] sm:$0xff]  ;;  %v134_v4 = vld [vmem:[%s669_s5 + $0x8] sm:$0xff]  ;;  %v38_v6 = vld [vmem:[%s664_s0] sm:$0xff]  ;;  %v498_v35 = vmov 2102212464  }
  0x10   :  { %138 = vperm.xlu0 %441, %v133_v1   ;;  %412 = vmatpush3.msra.mxu0 %v43_v2  ;;  %v41_v5 = vld [vmem:[#allocation2 + $0x8] sm:$0xff]  ;;  %v40_v7 = vld [vmem:[#allocation2] sm:$0xff]  ;;  %v499_v39 = vmov 920167782   ;;  %v500_v41 = vmov 683565275  }
  0x11   :  { %413 = vmatprep.subr.mxu0 %v42_v3  ;;  %419 = vmatprep.mubr.msk.f32.mxu0 %vm51_vm0, %v38_v6  ;;  %v39_v8 = vld [vmem:[%s664_s0 + $0x8] sm:$0xff]  ;;  %v395_v9 = vld [vmem:[%s667_s3] ss:$0 sm:$0xff]  ;;  %v501_v44 = vmov 1326507024  }
  0x12   :  { %414 = vmatpush3.msra.mxu0 %v42_v3  ;;  %v396_v10 = vld [vmem:[%s668_s4] ss:$0 sm:$0xff]  ;;  %v502_v47 = vmov 2475754826   ;;  %v503_v52 = vmov 2131351028  }
  0x13   :  { %415 = vmatprep.subr.mxu0 %v41_v5 }
  0x14   :  { %143 = vperm.xlu0 %441, %v134_v4   ;;  %416 = vmatpush3.msra.mxu0 %v41_v5 }
  0x15   :  { %417 = vmatprep.subr.mxu0 %v40_v7 }
  0x16   :  { %418 = vmatpush3.msra.mxu0 %v40_v7 }
  0x17   :  { %420 = vmatmul.mubr.msk.f32.vlgmr.msra.gmra.mxu0 %vm51_vm0, %v39_v8 }
  0x8b   :  { %v139_v11 = vpop.permute.xlu0 %138 }
  0x8c   :  { %v152_v12 = vmul.f32 %v395_v9, %v139_v11 }
  0x8e   :  { %v566_v13 = vadd.f32 %v396_v10, %v152_v12 }
  0x8f   :  { %v144_v14 = vpop.permute.xlu0 %143 }
  0x90   :  { %v166_v15 = vand.u32 2139095040, %v566_v13  ;;  %v153_v16 = vmul.f32 %v395_v9, %v144_v14  ;;  %v163_v17 = vand.u32 2147483647, %v566_v13 }
  0x92   :  { %v167_v18 = vshrl.u32 %v166_v15, 23  ;;  %v570_v19 = vadd.f32 %v396_v10, %v153_v16  ;;  %v170_v23 = vand.u32 8388607, %v163_v17 }
  0x94   :  { %v397_v20 = vadd.s32 4294967169, %v167_v18  ;;  %v270_v21 = vand.u32 2139095040, %v570_v19  ;;  %v267_v22 = vand.u32 2147483647, %v570_v19  ;;  %v171_v29 = vor.u32 8388608, %v170_v23 }
  0x95   :  { %vm269_vm15 = vcmp.lt.s32.totalorder %v570_v19, 0 }
  0x96   :  { %v173_v24 = vadd.s32 1, %v397_v20  ;;  %v271_v25 = vshrl.u32 %v270_v21, 23  ;;  %v274_v26 = vand.u32 8388607, %v267_v22  ;;  %v584_v38 = vshll.u32 %v171_v29, 8 }
  0x97   :  { %vm640_vm0 = vcmp.le.f32.partialorder %v267_v22, 0.7853982 }
  0x98   :  { %vm174_vm1 = vcmp.gt.s32.totalorder %v173_v24, 0  ;;  %v401_v27 = vadd.s32 4294967169, %v271_v25  ;;  %v275_v28 = vor.u32 8388608, %v274_v26 }
  0x99   :  { %v175_v30 = vsel %vm174_vm1, %v173_v24, 0  ;;  %vm165_vm1 = vcmp.lt.s32.totalorder %v566_v13, 0 }
  0x9a   :  { %v578_v31 = vshrl.u32 %v175_v30, 5  ;;  %v177_v32 = vand.u32 31, %v175_v30  ;;  %v277_v33 = vadd.s32 1, %v401_v27  ;;  %v582_v37 = vshll.u32 %v275_v28, 8 }
  0x9c   :  { %v580_v34 = vsub.s32 32, %v177_v32  ;;  %v189_v36 = vshll.u32 %v498_v35, %v177_v32  ;;  %v192_v40 = vshll.u32 %v499_v39, %v177_v32  ;;  %vm198_vm2 = vcmp.lt.s32.totalorder %v578_v31, 4 }
  0x9d   :  { %vm278_vm3 = vcmp.gt.s32.totalorder %v277_v33, 0  ;;  %v180_v42 = vshll.u32 %v500_v41, %v177_v32  ;;  %v183_v48 = vshll.u32 %v502_v47, %v177_v32  ;;  %v186_v53 = vshll.u32 %v503_v52, %v177_v32 }
  0x9e   :  { %v190_v43 = vshrl.u32 %v499_v39, %v580_v34  ;;  %v193_v45 = vshrl.u32 %v501_v44, %v580_v34  ;;  %v279_v46 = vsel %vm278_vm3, %v277_v33, 0  ;;  %v181_v51 = vshrl.u32 %v502_v47, %v580_v34 }
  0x9f   :  { %v280_v49 = vshrl.u32 %v279_v46, 5  ;;  %v281_v50 = vand.u32 31, %v279_v46  ;;  %v184_v56 = vshrl.u32 %v503_v52, %v580_v34  ;;  %v187_v57 = vshrl.u32 %v498_v35, %v580_v34 }
  0xa0   :  { %v191_v54 = vor.u32 %v190_v43, %v189_v36  ;;  %v194_v55 = vor.u32 %v193_v45, %v192_v40  ;;  %v182_v14 = vor.u32 %v181_v51, %v180_v42  ;;  %v179_v40 = vshrl.u32 %v500_v41, %v580_v34 }
  0xa1   :  { %v282_v58 = vsub.s32 32, %v281_v50  ;;  %v293_v59 = vshll.u32 %v498_v35, %v281_v50  ;;  %v296_v60 = vshll.u32 %v499_v39, %v281_v50  ;;  %vm302_vm4 = vcmp.lt.s32.totalorder %v280_v49, 4 }
  0xa2   :  { %v204_v61 = vsel %vm198_vm2, %v191_v54, 920167782  ;;  %v208_v62 = vsel %vm198_vm2, %v194_v55, 1326507024  ;;  %v284_v63 = vshll.u32 %v500_v41, %v281_v50  ;;  %v287_v0 = vshll.u32 %v502_v47, %v281_v50 }
  0xa3   :  { %v294_v1 = vshrl.u32 %v499_v39, %v282_v58  ;;  %v297_v2 = vshrl.u32 %v501_v44, %v282_v58  ;;  %v283_v3 = vshrl.u32 %v500_v41, %v282_v58  ;;  %v285_v4 = vshrl.u32 %v502_v47, %v282_v58 }
  0xa4   :  { %v288_v5 = vshrl.u32 %v503_v52, %v282_v58  ;;  %v290_v6 = vshll.u32 %v503_v52, %v281_v50  ;;  %v291_v7 = vshrl.u32 %v498_v35, %v282_v58  ;;  %vm299_vm5 = vcmp.lt.s32.totalorder %v280_v49, 1 }
  0xa5   :  { %v295_v8 = vor.u32 %v294_v1, %v293_v59  ;;  %v298_v9 = vor.u32 %v297_v2, %v296_v60  ;;  %v286_v10 = vor.u32 %v285_v4, %v284_v63  ;;  %vm300_vm6 = vcmp.lt.s32.totalorder %v280_v49, 2 }
  0xa6   :  { %v289_v11 = vor.u32 %v288_v5, %v287_v0  ;;  %v292_v12 = vor.u32 %v291_v7, %v290_v6  ;;  %vm301_vm7 = vcmp.lt.s32.totalorder %v280_v49, 3  ;;  %v185_v20 = vor.u32 %v184_v56, %v183_v48 }
  0xa7   :  { %v308_v15 = vsel %vm302_vm4, %v295_v8, 920167782  ;;  %v312_v16 = vsel %vm302_vm4, %v298_v9, 1326507024  ;;  %v303_v18 = vsel %vm299_vm5, %v283_v3, %v286_v10  ;;  %v188_v29 = vor.u32 %v187_v57, %v186_v53 }
  0xa8   :  { %v304_v21 = vsel %vm302_vm4, %v292_v12, 2102212464  ;;  %v307_v23 = vsel %vm299_vm5, %v286_v10, %v289_v11  ;;  %v309_v24 = vsel %vm301_vm7, %v292_v12, %v308_v15  ;;  %v311_v25 = vsel %vm299_vm5, %v289_v11, %v292_v12 }
  0xa9   :  { %v305_v26 = vsel %vm301_vm7, %v289_v11, %v304_v21  ;;  %v310_v27 = vsel %vm300_vm6, %v307_v23, %v309_v24  ;;  %v313_v28 = vsel %vm301_vm7, %v295_v8, %v312_v16  ;;  %vm195_vm8 = vcmp.lt.s32.totalorder %v578_v31, 1 }
  0xaa   :  { %v306_v30 = vsel %vm300_vm6, %v303_v18, %v305_v26  ;;  %v314_v32 = vsel %vm300_vm6, %v311_v25, %v313_v28  ;;  %v606_v33 = vmul.u32.u64.low %v582_v37, %v310_v27  ;;  %v607_v35 = vmul.u32.u64.high %v582_v37, %v310_v27, %v606_v33 }
  0xab   :  { %v610_v36 = vmul.u32.u64.low %v582_v37, %v314_v32  ;;  %v611_v39 = vmul.u32.u64.high %v582_v37, %v314_v32, %v610_v36  ;;  %v322_v42 = vmul.u32 %v582_v37, %v306_v30  ;;  %vm197_vm9 = vcmp.lt.s32.totalorder %v578_v31, 3 }
  0xac   :  { %v200_v43 = vsel %vm198_vm2, %v188_v29, 2102212464  ;;  %v203_v44 = vsel %vm195_vm8, %v182_v14, %v185_v20  ;;  %vm196_vm10 = vcmp.lt.s32.totalorder %v578_v31, 2  ;;  %v205_v45 = vsel %vm197_vm9, %v188_v29, %v204_v61 }
  0xad   :  { %v207_v46 = vsel %vm195_vm8, %v185_v20, %v188_v29  ;;  %v209_v47 = vsel %vm197_vm9, %v191_v54, %v208_v62  ;;  %v325_v48 = vadd.s32 1, %v607_v35  ;;  %v199_v49 = vsel %vm195_vm8, %v179_v40, %v182_v14 }
  0xae   :  { %v206_v50 = vsel %vm196_vm10, %v203_v44, %v205_v45  ;;  %v210_v34 = vsel %vm196_vm10, %v207_v46, %v209_v47  ;;  %vm324_vm11 = vc.u32 %v611_v39, %v606_v33  ;;  %v201_v41 = vsel %vm197_vm9, %v185_v20, %v200_v43 }
  0xaf   :  { %v623_v37 = vmul.u32.u64.low %v584_v38, %v210_v34  ;;  %v624_v51 = vmul.u32.u64.high %v584_v38, %v210_v34, %v623_v37  ;;  %v326_v52 = vsel %vm324_vm11, %v325_v48, %v607_v35  ;;  %v202_v54 = vsel %vm196_vm10, %v199_v49, %v201_v41 }
  0xb0   :  { %v628_v53 = vmul.u32.u64.low %v584_v38, %v206_v50  ;;  %v629_v31 = vmul.u32.u64.high %v584_v38, %v206_v50, %v628_v53  ;;  %v327_v55 = vadd.s32 %v326_v52, %v322_v42  ;;  %v218_v59 = vmul.u32 %v584_v38, %v202_v54 }
  0xb1   :  { %v323_v11 = vadd.s32 %v606_v33, %v611_v39  ;;  %vm164_vm2 = vcmp.le.f32.partialorder %v163_v17, 0.7853982  ;;  %v392_v17 = vld [vmem:[%s666_s2] ss:$0 sm:$0xff]  ;;  %vm359_vm6 = vweird.f32 %v570_v19  ;;  %s504_s2 = smov [#allocation5]   ;;  %vm255_vm10 = vweird.f32 %v566_v13 }
  0xb2   :  { %v328_v56 = vadd.s32 536870912, %v327_v55  ;;  %vm220_vm12 = vc.u32 %v624_v51, %v628_v53  ;;  %v221_v57 = vadd.s32 1, %v629_v31  ;;  %v219_v26 = vadd.s32 %v628_v53, %v624_v51  ;;  %s380_s4 = sshll.u32 %s504_s2, 4  ;;  %s381_s4 = int_to_ptr.vmem [resolvable:$true] %s380_s4 }
  0xb3   :  { %s470_s14 = scalar_lea.vmem %s381_s4, 256  ;;  %p475_p6 = scmp.lt.s32.totalorder %s381_s4, %s381_s4 }
  0xb4   :  { %v329_v58 = vshrl.u32 %v328_v56, 30  ;;  %v222_v60 = vsel %vm220_vm12, %v221_v57, %v629_v31  ;;  %p471_p5 = scmp.ne.s32.totalorder %s381_s4, %s470_s14  ;;  %p476_p7 = scmp.lt.s32.totalorder %s470_s14, %s470_s14 }
  0xb5   :  { %v223_v62 = vadd.s32 %v222_v60, %v218_v59 }
  0xb6   :  { %v330_v61 = vshll.u32 %v329_v58, 30  ;;  %v353_v43 = vsub.s32 4, %v329_v58  ;;  %p477_p8 = por %p476_p7, %p475_p6 }
  0xb7   :  { %v224_v0 = vadd.s32 536870912, %v223_v62 }
  0xb8   :  { %v331_v63 = vsub.s32 %v327_v55, %v330_v61  ;;  %v354_v50 = vsel %vm269_vm15, %v353_v43, %v329_v58  ;;  %p478_p9 = pnand %p477_p8, %p471_p5 }
  0xb9   :  { %v225_v2 = vshrl.u32 %v224_v0, 30  ;;  %v356_v22 = vsel %vm640_vm0, 0, %v354_v50 }
  0xba   :  { %v333_v1 = vsub.s32 0, %v331_v63  ;;  %v360_v53 = vadd.s32 3, %v356_v22 }
  0xbb   :  { %v226_v4 = vshll.u32 %v225_v2, 30  ;;  %v249_v37 = vsub.s32 4, %v225_v2 }
  0xbc   :  { %v402_v3 = vmin.u32 %v333_v1, %v331_v63  ;;  %v361_v55 = vand.u32 3, %v360_v53 }
  0xbd   :  { %v227_v6 = vsub.s32 %v223_v62, %v226_v4  ;;  %v250_v31 = vsel %vm165_vm1, %v249_v37, %v225_v2 }
  0xbe   :  { %v335_v5 = vclz %v402_v3  ;;  %v252_v54 = vsel %vm164_vm2, 0, %v250_v31  ;;  %vm366_vm3 = vcmp.eq.s32.totalorder %v361_v55, 2  ;;  %vm363_vm4 = vcmp.eq.s32.totalorder %v361_v55, 0 }
  0xbf   :  { %v229_v8 = vsub.s32 0, %v227_v6  ;;  %v256_v59 = vadd.s32 3, %v252_v54  ;;  %vm362_vm5 = vcmp.lt.s32.totalorder %v361_v55, 2 }
  0xc0   :  { %v403_v7 = vadd.s32 4294967294, %v335_v5 }
  0xc1   :  { %v398_v10 = vmin.u32 %v229_v8, %v227_v6  ;;  %v257_v2 = vand.u32 3, %v256_v59 }
  0xc2   :  { %vm404_vm13 = vcmp.lt.s32.totalorder %v403_v7, 0 }
  0xc3   :  { %v338_v9 = vsel %vm404_vm13, 0, %v403_v7  ;;  %v231_v14 = vclz %v398_v10  ;;  %vm262_vm7 = vcmp.eq.s32.totalorder %v257_v2, 2  ;;  %vm259_vm8 = vcmp.eq.s32.totalorder %v257_v2, 0 }
  0xc4   :  { %v339_v38 = vsub.s32 32, %v338_v9  ;;  %v343_v12 = vsub.s32 4294967266, %v338_v9  ;;  %v340_v15 = vshll.u32 %v331_v63, %v338_v9  ;;  %vm258_vm9 = vcmp.lt.s32.totalorder %v257_v2, 2 }
  0xc5   :  { %v399_v20 = vadd.s32 4294967294, %v231_v14 }
  0xc6   :  { %v341_v16 = vshrl.u32 %v323_v11, %v339_v38  ;;  %v344_v18 = vadd.s32 127, %v343_v12 }
  0xc7   :  { %vm400_vm14 = vcmp.lt.s32.totalorder %v399_v20, 0 }
  0xc8   :  { %v342_v21 = vor.u32 %v341_v16, %v340_v15  ;;  %v345_v23 = vshll.u32 %v344_v18, 23  ;;  %v234_v25 = vsel %vm400_vm14, 0, %v399_v20 }
  0xc9   :  { %v235_v27 = vsub.s32 32, %v234_v25  ;;  %v239_v28 = vsub.s32 4294967266, %v234_v25  ;;  %v236_v32 = vshll.u32 %v227_v6, %v234_v25 }
  0xca   :  { %v346_v24 = vor.u32 4788187, %v345_v23  ;;  %v349_v30 = vcvt.s32.f32 %v342_v21 }
  0xcb   :  { %v237_v33 = vshrl.u32 %v219_v26, %v235_v27  ;;  %v240_v35 = vadd.s32 127, %v239_v28 }
  0xcc   :  { %v347_v29 = vand.u32 2147483647, %v346_v24 }
  0xcd   :  { %v238_v39 = vor.u32 %v237_v33, %v236_v32  ;;  %v241_v40 = vshll.u32 %v240_v35, 23 }
  0xce   :  { %v350_v36 = vmul.f32 %v349_v30, %v347_v29 }
  0xcf   :  { %v242_v44 = vor.u32 4788187, %v241_v40  ;;  %v245_v49 = vcvt.s32.f32 %v238_v39 }
  0xd0   :  { %v351_v42 = vxor.u32 2147483648, %v350_v36 }
  0xd1   :  { %v243_v48 = vand.u32 2147483647, %v242_v44 }
  0xd2   :  { %v352_v46 = vsel %vm269_vm15, %v351_v42, %v350_v36 }
  0xd3   :  { %v355_v47 = vsel %vm640_vm0, %v570_v19, %v352_v46  ;;  %v246_v34 = vmul.f32 %v245_v49, %v243_v48 }
  0xd4   :  { %442 = vcosq.f32 %v355_v47 }
  0xd5   :  { %444 = vsinq.f32 %v355_v47  ;;  %v247_v41 = vxor.u32 2147483648, %v246_v34 }
  0xd7   :  { %v248_v51 = vsel %vm165_vm1, %v247_v41, %v246_v34  ;;  %v421_v61 = vpop.f32.mrf.mxu0 }
  0xd8   :  { %v251_v52 = vsel %vm164_vm2, %v566_v13, %v248_v51  ;;  %v130_v0 = vadd.f32 %v421_v61, %v392_v17 }
  0xd9   :  { %446 = vcosq.f32 %v251_v52  ;;  %v124_v6 = vpop.f32.mrf.mxu0 }
  0xda   :  { %448 = vsinq.f32 %v251_v52  ;;  %v125_v10 = vadd.f32 %v392_v17, %v124_v6 }
  0xe1   :  { %v443_v56 = vpop.eup %442 }
  0xe2   :  { %v445_v57 = vpop.eup %444  ;;  %v367_v58 = vxor.u32 2147483648, %v443_v56 }
  0xe3   :  { %v364_v60 = vxor.u32 2147483648, %v445_v57 }
  0xe4   :  { %v368_v62 = vsel %vm366_vm3, %v367_v58, %v445_v57 }
  0xe5   :  { %v365_v63 = vsel %vm363_vm4, %v443_v56, %v364_v60 }
  0xe6   :  { %v369_v1 = vsel %vm362_vm5, %v365_v63, %v368_v62  ;;  %v447_v4 = vpop.eup %446 }
  0xe7   :  { %v370_v3 = vsel %vm359_vm6, nan, %v369_v1  ;;  %v449_v7 = vpop.eup %448  ;;  %v263_v8 = vxor.u32 2147483648, %v447_v4 }
  0xe8   :  { %v372_v5 = vadd.f32 %v370_v3, %v130_v0  ;;  %v260_v9 = vxor.u32 2147483648, %v449_v7 }
  0xe9   :  { %v264_v11 = vsel %vm262_vm7, %v263_v8, %v449_v7 }
  0xea   :  { %374 = vst [vmem:[#allocation5 + $0x8] sm:$0xff] %v372_v5  ;;  %v261_v38 = vsel %vm259_vm8, %v447_v4, %v260_v9 }
  0xeb   :  { %v265_v19 = vsel %vm258_vm9, %v261_v38, %v264_v11 }
  0xec   :  { %v266_v12 = vsel %vm255_vm10, nan, %v265_v19 }
  0xed   :  { %v371_v14 = vadd.f32 %v266_v12, %v125_v10 }
  0xef   :  { %373 = vst [vmem:[#allocation5] sm:$0xff] %v371_v14 }
  0xf0   :  { %481 = shalt.err (!%p478_p9)
}
  0xf1   :  { %386 = dma.vmem_to_hbm [thread:$0]  %s381_s4, 256, %s670_s6, [#allocation4], %s495_s24, %s495_s24, %s496_s25  }
  0xf2   :  { %492 = dma.done.wait [#allocation4], 256  }
  0xf3   :  { %493 = vsyncadd [#allocation4], 4294967040 }
  0xf4   :  { %390 = vsyncpa [#allocation3], 1 }
  0xf5   :  { %391 = vsyncpa [#allocation4], 1 }

</bundles_post_ra>
